<compile_context>
chip_gen: v5e
topology: v5e:2x2
jax: 0.10.0
libtpu: 0.0.40
codegen_flags: <defaults>
</compile_context>

<pallas_src>
import jax
import jax.numpy as jnp
from jax.experimental import pallas as pl
from jax.experimental.pallas import tpu as pltpu


def _round_up(x: int, m: int) -> int:
    return ((x + m - 1) // m) * m


def highway_kernel(x_ref, w_ref, b_ref, o_ref):
    """Fused highway forward for one (TILE_B, E_pad) batch tile.

    One wide matmul against the concatenated (E_pad, 2*E_pad) weight yields
    [proj | gate]; the epilogue does relu / sigmoid / blend in f32.
    """
    x = x_ref[...]  # (TILE_B, E_pad) f32
    e_pad = o_ref.shape[-1]

    # Single MXU pass: (TILE_B, E_pad) @ (E_pad, 2*E_pad) + (1, 2*E_pad)
    y = jnp.dot(x, w_ref[...], preferred_element_type=jnp.float32) + b_ref[...]

    # Slice at a 128-aligned boundary (E_pad is a multiple of 128) -> cheap.
    xproj = jnp.maximum(y[:, :e_pad], 0.0)           # relu(proj)
    xgate = jax.nn.sigmoid(y[:, e_pad:])             # sigmoid(gate)

    # Xhighway = Xgate * Xproj + (1 - Xgate) * x
    o_ref[...] = (xgate * xproj + (1.0 - xgate) * x).astype(o_ref.dtype)


def highway_forward(x, w_proj, b_proj, w_gate, b_gate, *, tile_b=256):
    """Highway forward pass.

    x:       (B, E) float32
    w_*:     (E, E)  stored as (in_features, out_features), i.e. y = x @ W + b
    b_*:     (E,) or (1, E)
    returns: (B, E) float32
    """
    B, E = x.shape
    b_proj = b_proj.reshape(1, E)
    b_gate = b_gate.reshape(1, E)

    # ---- host-side layout prep -------------------------------------------
    # Lane-dense feature dim: pad E up to a multiple of 128.
    E_pad = max(128, _round_up(E, 128))
    # Batch tile: multiple of 8 sublanes; single tile if the batch is small.
    tile_b = max(8, min(_round_up(tile_b, 8), _round_up(B, 8)))
    B_pad = _round_up(B, tile_b)

    x_p = jnp.pad(x, ((0, B_pad - B), (0, E_pad - E)))
    wp_p = jnp.pad(w_proj, ((0, E_pad - E), (0, E_pad - E)))
    wg_p = jnp.pad(w_gate, ((0, E_pad - E), (0, E_pad - E)))
    bp_p = jnp.pad(b_proj, ((0, 0), (0, E_pad - E)))
    bg_p = jnp.pad(b_gate, ((0, 0), (0, E_pad - E)))

    # Fuse proj & gate into one wide matmul: W_cat (E_pad, 2*E_pad).
    w_cat = jnp.concatenate([wp_p, wg_p], axis=1)
    b_cat = jnp.concatenate([bp_p, bg_p], axis=1)

    grid = (B_pad // tile_b,)

    cost = pl.CostEstimate(
        flops=2 * B_pad * E_pad * (2 * E_pad),
        transcendentals=B_pad * E_pad,  # sigmoid
        bytes_accessed=(x_p.size + w_cat.size + b_cat.size + B_pad * E_pad) * 4,
    )

    out_p = pl.pallas_call(
        highway_kernel,
        out_shape=jax.ShapeDtypeStruct((B_pad, E_pad), x.dtype),
        grid=grid,
        in_specs=[
            # batch tile of x — streamed / double-buffered over the grid
            pl.BlockSpec((tile_b, E_pad), lambda i: (i, 0)),
            # fused weights & bias — constant index_map => VMEM-resident
            pl.BlockSpec((E_pad, 2 * E_pad), lambda i: (0, 0)),
            pl.BlockSpec((1, 2 * E_pad), lambda i: (0, 0)),
        ],
        out_specs=pl.BlockSpec((tile_b, E_pad), lambda i: (i, 0)),
        compiler_params=pltpu.CompilerParams(
            # batch tiles are independent -> shard across TCs on v7x megacore
            dimension_semantics=("parallel",),
            vmem_limit_bytes=64 * 1024 * 1024,
        ),
        cost_estimate=cost,
    )(x_p, w_cat, b_cat)

    return out_p[:B, :E]


def highway_reference(x, w_proj, b_proj, w_gate, b_gate):
    """Pure-JAX reference matching the PyTorch forward."""
    xproj = jax.nn.relu(x @ w_proj + b_proj)
    xgate = jax.nn.sigmoid(x @ w_gate + b_gate)
    return xgate * xproj + (1.0 - xgate) * x


if __name__ == "__main__":
    # Small shapes implied by the module: (batch_size, word_embedding_size)
    batch_size = 8
    word_embedding_size = 32

    key = jax.random.PRNGKey(0)
    kx, kwp, kbp, kwg, kbg = jax.random.split(key, 5)

    x = jax.random.normal(kx, (batch_size, word_embedding_size), dtype=jnp.float32)

    # Deterministic parameter init (same scale as nn.Linear's uniform fan-in init).
    bound = 1.0 / (word_embedding_size ** 0.5)
    w_proj = jax.random.uniform(
        kwp, (word_embedding_size, word_embedding_size),
        minval=-bound, maxval=bound, dtype=jnp.float32)
    b_proj = jax.random.uniform(
        kbp, (1, word_embedding_size), minval=-bound, maxval=bound, dtype=jnp.float32)
    w_gate = jax.random.uniform(
        kwg, (word_embedding_size, word_embedding_size),
        minval=-bound, maxval=bound, dtype=jnp.float32)
    b_gate = jax.random.uniform(
        kbg, (1, word_embedding_size), minval=-bound, maxval=bound, dtype=jnp.float32)

    out = highway_forward(x, w_proj, b_proj, w_gate, b_gate)
    out = jax.block_until_ready(out)

    ref = highway_reference(x, w_proj, b_proj, w_gate, b_gate)
    assert out.shape == (batch_size, word_embedding_size)
    assert jnp.allclose(out, ref, atol=1e-5, rtol=1e-5), "mismatch vs reference"

    print("KERNEL_OK")
</pallas_src>

<mosaic_0001>
module attributes {stable_mosaic.version = 11 : i64} {
  func.func @highway_kernel(%arg0: i32, %arg1: memref<8x128xf32, #tpu.memory_space<vmem>>, %arg2: memref<128x256xf32, #tpu.memory_space<vmem>>, %arg3: memref<1x256xf32, #tpu.memory_space<vmem>>, %arg4: memref<8x128xf32, #tpu.memory_space<vmem>>) attributes {dimension_semantics = [#tpu.dimension_semantics<parallel>], iteration_bounds = array<i64: 1>, scalar_prefetch = 0 : i64, scratch_operands = 0 : i64, tpu.core_type = #tpu.core_type<tc>, window_params = [{transform_indices = @transform_0, window_bounds = array<i64: 8, 128>}, {pipeline_mode = #tpu.pipeline_mode<synchronous>, transform_indices = @transform_1, window_bounds = array<i64: 128, 256>}, {pipeline_mode = #tpu.pipeline_mode<synchronous>, transform_indices = @transform_2, window_bounds = array<i64: 1, 256>}, {transform_indices = @transform_3, window_bounds = array<i64: 8, 128>}]} {
    %c0 = arith.constant 0 : index
    %c0_0 = arith.constant 0 : index
    %0 = vector.load %arg1[%c0, %c0_0] : memref<8x128xf32, #tpu.memory_space<vmem>>, vector<8x128xf32>
    %c0_1 = arith.constant 0 : index
    %c0_2 = arith.constant 0 : index
    %1 = vector.load %arg2[%c0_1, %c0_2] : memref<128x256xf32, #tpu.memory_space<vmem>>, vector<128x256xf32>
    %cst = arith.constant dense<0.000000e+00> : vector<8x256xf32>
    %2 = tpu.matmul %0, %1, %cst {dimension_numbers = #tpu.dot_dimension_numbers<[1], [0], [0], [1], [0, 0, 1, 1], [], []>} : vector<8x128xf32>, vector<128x256xf32>, vector<8x256xf32> -> vector<8x256xf32>
    %c0_3 = arith.constant 0 : index
    %c0_4 = arith.constant 0 : index
    %3 = vector.load %arg3[%c0_3, %c0_4] : memref<1x256xf32, #tpu.memory_space<vmem>>, vector<1x256xf32>
    %4 = vector.broadcast %3 : vector<1x256xf32> to vector<8x256xf32>
    %5 = arith.addf %2, %4 : vector<8x256xf32>
    %6 = vector.extract_strided_slice %5 {offsets = [0, 0], sizes = [8, 128], strides = [1, 1]} : vector<8x256xf32> to vector<8x128xf32>
    %cst_5 = arith.constant 0.000000e+00 : f32
    %7 = vector.broadcast %cst_5 : f32 to vector<8x128xf32>
    %8 = arith.maximumf %6, %7 : vector<8x128xf32>
    %9 = vector.extract_strided_slice %5 {offsets = [0, 128], sizes = [8, 128], strides = [1, 1]} : vector<8x256xf32> to vector<8x128xf32>
    %10 = arith.negf %9 : vector<8x128xf32>
    %11 = math.exp %10 : vector<8x128xf32>
    %cst_6 = arith.constant 1.000000e+00 : f32
    %12 = vector.broadcast %cst_6 : f32 to vector<8x128xf32>
    %13 = arith.addf %12, %11 : vector<8x128xf32>
    %14 = arith.divf %12, %13 : vector<8x128xf32>
    %15 = arith.mulf %14, %8 : vector<8x128xf32>
    %cst_7 = arith.constant 1.000000e+00 : f32
    %16 = vector.broadcast %cst_7 : f32 to vector<8x128xf32>
    %17 = arith.subf %16, %14 : vector<8x128xf32>
    %18 = arith.mulf %17, %0 : vector<8x128xf32>
    %19 = arith.addf %15, %18 : vector<8x128xf32>
    %c0_8 = arith.constant 0 : index
    %c0_9 = arith.constant 0 : index
    %20 = vector.load %arg4[%c0_8, %c0_9] : memref<8x128xf32, #tpu.memory_space<vmem>>, vector<8x128xf32>
    tpu.vector_store %arg4[%c0_8, %c0_9], %19 {strides = array<i32>} : memref<8x128xf32, #tpu.memory_space<vmem>>, vector<8x128xf32>,
    return
  }
  func.func @transform_0(%arg0: i32) -> (i32, i32) {
    %c0_i32 = arith.constant 0 : i32
    %c0_i32_0 = arith.constant 0 : i32
    return %arg0, %c0_i32 : i32, i32
  }
  func.func @transform_1(%arg0: i32) -> (i32, i32) {
    %c0_i32 = arith.constant 0 : i32
    %c0_i32_0 = arith.constant 0 : i32
    %c0_i32_1 = arith.constant 0 : i32
    return %c0_i32, %c0_i32_0 : i32, i32
  }
  func.func @transform_2(%arg0: i32) -> (i32, i32) {
    %c0_i32 = arith.constant 0 : i32
    %c0_i32_0 = arith.constant 0 : i32
    %c0_i32_1 = arith.constant 0 : i32
    return %c0_i32, %c0_i32_0 : i32, i32
  }
  func.func @transform_3(%arg0: i32) -> (i32, i32) {
    %c0_i32 = arith.constant 0 : i32
    %c0_i32_0 = arith.constant 0 : i32
    return %arg0, %c0_i32 : i32, i32
  }
}

</mosaic_0001>

<bundles_post_ra>
// kernel: tpu_custom_call.1
= control target key start
LH: loop header
LB: loop body
LE: loop exit
PB: predicated region body
PF: predicated region fallthrough
CT: control target
= control target key end

     0   :  { %8 = vsyncpa [#allocation3], 0  ;;  %s331_s0 = inlined_call_operand.hbm [shape: f32[8,128], index: 0, kind: input, shape index: {}]   ;;  %s332_s1 = inlined_call_operand.hbm [shape: f32[128,256], index: 1, kind: input, shape index: {}]   ;;  %s333_s2 = inlined_call_operand.hbm [shape: f32[1,256], index: 2, kind: input, shape index: {}]   ;;  %s334_s3 = inlined_call_operand.hbm [shape: f32[8,128], index: 3, kind: output, shape index: {}]  }
   0x1   :  { %9 = vsyncpa [#allocation6], 0  ;;  %s26_s14 = sshll.u32 %s332_s1, 4  ;;  %s27_s14 = int_to_ptr.hbm [resolvable:$true] %s26_s14 }
   0x2   :  { %10 = vsyncpa [#allocation4], 0  ;;  %s293_s15 = smov [#allocation5]   ;;  %s16_s19 = sshll.u32 %s331_s0, 4  ;;  %s17_s19 = int_to_ptr.hbm [resolvable:$true] %s16_s19 }
   0x3   :  { %s28_s16 = sshll.u32 %s293_s15, 4  ;;  %s294_s20 = smov 256   ;;  %s29_s16 = int_to_ptr.vmem [resolvable:$true] %s28_s16 }
   0x4   :  { %s295_s21 = smov 16   ;;  %s296_s22 = smov [#allocation2]  }
   0x5   :  { %34 = dma.hbm_to_vmem [thread:$0]  %s27_s14, 4096, %s29_s16, [#allocation6], %s294_s20, %s294_s20, %s295_s21  }
   0x6   :  { %s18_s23 = sshll.u32 %s296_s22, 4  ;;  %s40_s26 = sshll.u32 %s333_s2, 4  ;;  %s19_s23 = int_to_ptr.vmem [resolvable:$true] %s18_s23  ;;  %s41_s26 = int_to_ptr.hbm [resolvable:$true] %s40_s26 }
   0x7   :  { %21 = dma.hbm_to_vmem [thread:$0]  %s17_s19, 128, %s19_s23, [#allocation3]  }
   0x8   :  { %s297_s1 = smov [#allocation7]  }
   0x9   :  { %s42_s27 = sshll.u32 %s297_s1, 4  ;;  %s43_s27 = int_to_ptr.vmem [resolvable:$true] %s42_s27 }
   0xa   :  { %45 = dma.hbm_to_vmem [thread:$0]  %s41_s26, 32, %s43_s27, [#allocation6]  }
   0xb   :  { %287 = dma.done.wait [#allocation3], 128  }
   0xc   :  { %288 = vsyncadd [#allocation3], 4294967168 }
   0xd   :  { %289 = dma.done.wait [#allocation6], 4128  }
   0xe   :  { %290 = vsyncadd [#allocation6], 4294963168  ;;  %v90_v0 = vld [vmem:[#allocation5 + $0xf8] sm:$0xff]  ;;  %v88_v1 = vld [vmem:[#allocation5 + $0xe8] sm:$0xff]  ;;  %s298_s0 = smov [#allocation8]   ;;  %s169_s30 = sshll.u32 %s334_s3, 4  ;;  %s170_s30 = int_to_ptr.hbm [resolvable:$true] %s169_s30 }
   0xf   :  { %117 = vmatpush.msra.mxu1 %v90_v0  ;;  %v86_v2 = vld [vmem:[#allocation5 + $0xd8] sm:$0xff]  ;;  %v84_v3 = vld [vmem:[#allocation5 + $0xc8] sm:$0xff]  ;;  %v89_v4 = vld [vmem:[#allocation5 + $0xf0] sm:$0xff]  ;;  %s167_s2 = sshll.u32 %s298_s0, 4  ;;  %s168_s2 = int_to_ptr.vmem [resolvable:$true] %s167_s2 }
  0x10   :  { %97 = vmatpush.msra.mxu0 %v89_v4  ;;  %v87_v5 = vld [vmem:[#allocation5 + $0xe0] sm:$0xff]  ;;  %v82_v6 = vld [vmem:[#allocation5 + $0xb8] sm:$0xff]  ;;  %v85_v7 = vld [vmem:[#allocation5 + $0xd0] sm:$0xff] }
  0x11   :  { %118 = vmatpush.msra.mxu1 %v88_v1  ;;  %v80_v8 = vld [vmem:[#allocation5 + $0xa8] sm:$0xff]  ;;  %v83_v9 = vld [vmem:[#allocation5 + $0xc0] sm:$0xff]  ;;  %v78_v10 = vld [vmem:[#allocation5 + $0x98] sm:$0xff] }
  0x12   :  { %98 = vmatpush.msra.mxu0 %v87_v5  ;;  %v81_v11 = vld [vmem:[#allocation5 + $0xb0] sm:$0xff]  ;;  %v76_v12 = vld [vmem:[#allocation5 + $0x88] sm:$0xff]  ;;  %v79_v13 = vld [vmem:[#allocation5 + $0xa0] sm:$0xff] }
  0x13   :  { %119 = vmatpush.msra.mxu1 %v86_v2  ;;  %v74_v14 = vld [vmem:[#allocation5 + $0x78] sm:$0xff]  ;;  %v77_v15 = vld [vmem:[#allocation5 + $0x90] sm:$0xff]  ;;  %v72_v16 = vld [vmem:[#allocation5 + $0x68] sm:$0xff] }
  0x14   :  { %99 = vmatpush.msra.mxu0 %v85_v7  ;;  %v75_v17 = vld [vmem:[#allocation5 + $0x80] sm:$0xff]  ;;  %v70_v18 = vld [vmem:[#allocation5 + $0x58] sm:$0xff]  ;;  %v73_v19 = vld [vmem:[#allocation5 + $0x70] sm:$0xff] }
  0x15   :  { %120 = vmatpush.msra.mxu1 %v84_v3  ;;  %v68_v20 = vld [vmem:[#allocation5 + $0x48] sm:$0xff]  ;;  %v71_v21 = vld [vmem:[#allocation5 + $0x60] sm:$0xff]  ;;  %v66_v22 = vld [vmem:[#allocation5 + $0x38] sm:$0xff] }
  0x16   :  { %100 = vmatpush.msra.mxu0 %v83_v9  ;;  %v69_v23 = vld [vmem:[#allocation5 + $0x50] sm:$0xff]  ;;  %v64_v24 = vld [vmem:[#allocation5 + $0x28] sm:$0xff]  ;;  %v67_v25 = vld [vmem:[#allocation5 + $0x40] sm:$0xff] }
  0x17   :  { %121 = vmatpush.msra.mxu1 %v82_v6  ;;  %v62_v26 = vld [vmem:[#allocation5 + $0x18] sm:$0xff]  ;;  %v65_v27 = vld [vmem:[#allocation5 + $0x30] sm:$0xff]  ;;  %v60_v28 = vld [vmem:[#allocation5 + $0x8] sm:$0xff] }
  0x18   :  { %101 = vmatpush.msra.mxu0 %v81_v11  ;;  %v63_v29 = vld [vmem:[#allocation5 + $0x20] sm:$0xff]  ;;  %v58_v30 = vld [vmem:[#allocation2] sm:$0xff]  ;;  %v61_v31 = vld [vmem:[#allocation5 + $0x10] sm:$0xff] }
  0x19   :  { %122 = vmatpush.msra.mxu1 %v80_v8  ;;  %v59_v32 = vld [vmem:[#allocation5] sm:$0xff] }
  0x1a   :  { %102 = vmatpush.msra.mxu0 %v79_v13  ;;  %v91_v33 = vld [vmem:[#allocation7] sm:$0x3] }
  0x1b   :  { %123 = vmatpush.msra.mxu1 %v78_v10  ;;  %v94_v34 = vperm.slane %v91_v33, 1  ;;  %v93_v41 = vperm.slane %v91_v33, 0 }
  0x1c   :  { %103 = vmatpush.msra.mxu0 %v77_v15 }
  0x1d   :  { %124 = vmatpush.msra.mxu1 %v76_v12 }
  0x1e   :  { %104 = vmatpush.msra.mxu0 %v75_v17 }
  0x1f   :  { %125 = vmatpush.msra.mxu1 %v74_v14 }
  0x20   :  { %105 = vmatpush.msra.mxu0 %v73_v19 }
  0x21   :  { %126 = vmatpush.msra.mxu1 %v72_v16 }
  0x22   :  { %106 = vmatpush.msra.mxu0 %v71_v21 }
  0x23   :  { %127 = vmatpush.msra.mxu1 %v70_v18 }
  0x24   :  { %107 = vmatpush.msra.mxu0 %v69_v23 }
  0x25   :  { %128 = vmatpush.msra.mxu1 %v68_v20 }
  0x26   :  { %108 = vmatpush.msra.mxu0 %v67_v25 }
  0x27   :  { %129 = vmatpush.msra.mxu1 %v66_v22 }
  0x28   :  { %109 = vmatpush.msra.mxu0 %v65_v27 }
  0x29   :  { %130 = vmatpush.msra.mxu1 %v64_v24 }
  0x2a   :  { %110 = vmatpush.msra.mxu0 %v63_v29 }
  0x2b   :  { %131 = vmatpush.msra.mxu1 %v62_v26 }
  0x2c   :  { %111 = vmatpush.msra.mxu0 %v61_v31 }
  0x2d   :  { %132 = vmatpush.msra.mxu1 %v60_v28 }
  0x2e   :  { %133 = vmatmul.f32.vlgmr.msra.gmra.mxu1 %v58_v30  ;;  %112 = vmatpush.msra.mxu0 %v59_v32 }
  0x2f   :  { %113 = vmatmul.f32.vlgmr.msra.gmra.mxu0 %v58_v30 }
  0xab   :  { %v134_v35 = vpop.f32.mrf.mxu1 }
  0xac   :  { %v135_v36 = vadd.f32 %v134_v35, %v94_v34  ;;  %v114_v43 = vpop.f32.mrf.mxu0 }
  0xad   :  { %v115_v46 = vadd.f32 %v114_v43, %v93_v41 }
  0xae   :  { %v180_v37 = vmul.f32 -1.442695, %v135_v36 }
  0xaf   :  { %v137_v51 = vmax.f32 %v115_v46, 0.0 }
  0xb0   :  { %187 = vpow2.f32 %v180_v37 }
  0xb6   :  { %v188_v38 = vpop.eup %187 }
  0xb7   :  { %v141_v39 = vadd.f32 1.0, %v188_v38 }
  0xb9   :  { %189 = vrcp.f32 %v141_v39  ;;  %v153_v45 = vand.u32 2147483648, %v141_v39  ;;  %v151_v48 = vand.u32 2147483647, %v141_v39  ;;  %vm147_vm1 = vweird.f32 %v141_v39 }
  0xbb   :  { %v154_v50 = vor.u32 1.1754944e-38, %v153_v45  ;;  %vm152_vm3 = vcmp.eq.f32.partialorder %v151_v48, 8.507059e+37 }
  0xbf   :  { %v190_v40 = vpop.eup %189 }
  0xc0   :  { %v143_v42 = vmul.f32 %v190_v40, %v141_v39  ;;  %vm148_vm0 = vweird.f32 %v190_v40 }
  0xc1   :  { %vm149_vm2 = vmor %vm147_vm1, %vm148_vm0 }
  0xc2   :  { %v144_v44 = vsub.f32 1.0, %v143_v42 }
  0xc4   :  { %v145_v47 = vmul.f32 %v190_v40, %v144_v44 }
  0xc6   :  { %v146_v49 = vadd.f32 %v190_v40, %v145_v47 }
  0xc8   :  { %v150_v52 = vsel %vm149_vm2, %v190_v40, %v146_v49 }
  0xc9   :  { %v155_v53 = vsel %vm152_vm3, %v154_v50, %v150_v52 }
  0xca   :  { %v158_v54 = vsub.f32 1.0, %v155_v53  ;;  %v157_v55 = vmul.f32 %v155_v53, %v137_v51 }
  0xcc   :  { %v159_v56 = vmul.f32 %v158_v54, %v58_v30 }
  0xce   :  { %v160_v57 = vadd.f32 %v159_v56, %v157_v55 }
  0xd0   :  { %161 = vst [vmem:[#allocation8] sm:$0xff] %v160_v57 }
  0xd1   :  { %172 = dma.vmem_to_hbm [thread:$0]  %s168_s2, 128, %s170_s30, [#allocation4]  }
  0xd2   :  { %291 = dma.done.wait [#allocation4], 128  }
  0xd3   :  { %292 = vsyncadd [#allocation4], 4294967168 }
  0xd4   :  { %177 = vsyncpa [#allocation3], 1 }
  0xd5   :  { %178 = vsyncpa [#allocation6], 1 }
  0xd6   :  { %179 = vsyncpa [#allocation4], 1 }

</bundles_post_ra>
